<compile_context>
chip_gen: v7x
topology: tpu7x:2x2x1
jax: 0.10.0
libtpu: 0.0.40
codegen_flags: <defaults>
</compile_context>

<pallas_src>
import jax
import jax.numpy as jnp
from jax.experimental import pallas as pl
from jax.experimental.pallas import tpu as pltpu


def _round_up(v, m):
    return (v + m - 1) // m * m


def _pick_vmem_limit_bytes():
    """Generation-aware scoped-VMEM limit (v7x has 64 MiB/TC vs 128 MiB on v5e/v6e)."""
    cap = 128 * 1024 * 1024
    try:
        info = pltpu.get_tpu_info()
        cap = int(getattr(info, "vmem_capacity_bytes", cap))
    except Exception:
        pass
    # Leave headroom for compiler-internal scratch; never ask for more than 64 MiB.
    return min(int(cap * 3 // 4), 64 * 1024 * 1024)


def _biaffine_kernel(x_ref, w_ref, yt_ref, o_ref, xw_ref):
    # x_ref : (1, TM, Dp)    compute dtype (bf16)
    # w_ref : (1, Dp, Dp)    compute dtype
    # yt_ref: (1, Dp, TN)    compute dtype (y pre-transposed in the wrapper)
    # o_ref : (1, 1, TM, TN) output dtype
    # xw_ref: (TM, Dp)       VMEM scratch, persists across the innermost (Sy-tile) axis
    j = pl.program_id(3)

    @pl.when(j == 0)
    def _():
        # bf16 round-trip of the x@W intermediate: intentional (MXU-native LHS for
        # the second matmul); accumulation of both matmuls is still f32.
        xw_ref[...] = jnp.dot(
            x_ref[0], w_ref[0], preferred_element_type=jnp.float32
        ).astype(xw_ref.dtype)

    s = jnp.dot(xw_ref[...], yt_ref[0], preferred_element_type=jnp.float32)
    o_ref[0, 0] = s.astype(o_ref.dtype)


def biaffine_forward(x, y, weight, *, bias_x=True, bias_y=True,
                     compute_dtype=jnp.bfloat16, out_dtype=None,
                     tm=512, tn=2048):
    """x: [B, Sx, n_in], y: [B, Sy, n_in], weight: [n_out, n_in+bias_x, n_in+bias_y]."""
    # Output defaults to the compute dtype (bf16): the kernel is HBM-write-bound and
    # scores usually feed a softmax/argmax. Pass out_dtype=jnp.float32 to override.
    out_dtype = compute_dtype if out_dtype is None else out_dtype

    # Bias columns (cheap wrapper glue), matching torch.cat((x, ones), -1).
    if bias_x:
        x = jnp.concatenate([x, jnp.ones_like(x[..., :1])], axis=-1)
    if bias_y:
        y = jnp.concatenate([y, jnp.ones_like(y[..., :1])], axis=-1)

    B, Sx, Dx = x.shape
    By, Sy, Dy = y.shape
    n_out, Wx, Wy = weight.shape
    assert B == By and Wx == Dx and Wy == Dy

    # Pad contraction dims to a lane-aligned multiple of 128 (zero pad keeps math exact).
    Dxp = _round_up(Dx, 128)
    Dyp = _round_up(Dy, 128)

    in_itemsize = jnp.dtype(compute_dtype).itemsize
    out_itemsize = jnp.dtype(out_dtype).itemsize

    # Tile sizes: sublane tile a multiple of 16 (bf16 sublane packing), lane tile a
    # multiple of 128. TM covers all of Sx when Sx is moderate.
    TM = min(tm, _round_up(Sx, 16))
    TN = min(tn, _round_up(Sy, 128))

    # Shrink tiles until the (double-buffered inputs + output + scratch) footprint
    # fits the generation-aware VMEM budget — keeps bigger-tile wins portable to v7x.
    vmem_limit = _pick_vmem_limit_bytes()
    budget = int(vmem_limit * 0.85)

    def _footprint(tm_, tn_):
        return ((2 * tm_ * Dxp + 2 * Dxp * Dyp + 2 * Dyp * tn_) * in_itemsize
                + 2 * tm_ * tn_ * out_itemsize          # double-buffered output tile
                + tm_ * Dyp * in_itemsize)              # xw scratch

    while _footprint(TM, TN) > budget and TN > 128:
        TN = max(128, _round_up(TN // 2, 128))
    while _footprint(TM, TN) > budget and TM > 16:
        TM = max(16, _round_up(TM // 2, 16))

    Sxp = _round_up(Sx, TM)
    Syp = _round_up(Sy, TN)

    xp = jnp.pad(x, ((0, 0), (0, Sxp - Sx), (0, Dxp - Dx))).astype(compute_dtype)
    # Pre-transpose y once in HBM: (B, Dyp, Syp) -> plain (TM,D)@(D,TN) matmul in-kernel.
    ytp = jnp.pad(jnp.swapaxes(y, 1, 2),
                  ((0, 0), (0, Dyp - Dy), (0, Syp - Sy))).astype(compute_dtype)
    wp = jnp.pad(weight, ((0, 0), (0, Dxp - Dx), (0, Dyp - Dy))).astype(compute_dtype)

    grid = (B, n_out, Sxp // TM, Syp // TN)
    n_i = Sxp // TM

    cost = pl.CostEstimate(
        # x@W once per (b,o,i) plus (x@W)@y^T per output tile.
        flops=2 * B * n_out * Sxp * Dyp * (Dxp + Syp),
        transcendentals=0,
        bytes_accessed=(
            B * n_out * Sxp * Dxp * in_itemsize            # x tiles (re-read per o)
            + B * n_out * Dxp * Dyp * in_itemsize          # W (upper bound)
            + B * n_out * n_i * Dyp * Syp * in_itemsize    # y^T re-read per Sx tile
            + B * n_out * Sxp * Syp * out_itemsize         # output writes
        ),
    )

    out = pl.pallas_call(
        _biaffine_kernel,
        out_shape=jax.ShapeDtypeStruct((B, n_out, Sxp, Syp), out_dtype),
        grid_spec=pltpu.PrefetchScalarGridSpec(
            num_scalar_prefetch=0,
            grid=grid,
            in_specs=[
                pl.BlockSpec((1, TM, Dxp), lambda b, o, i, j: (b, i, 0)),
                pl.BlockSpec((1, Dxp, Dyp), lambda b, o, i, j: (o, 0, 0)),
                pl.BlockSpec((1, Dyp, TN), lambda b, o, i, j: (b, 0, j)),
            ],
            out_specs=pl.BlockSpec((1, 1, TM, TN), lambda b, o, i, j: (b, o, i, j)),
            scratch_shapes=[pltpu.VMEM((TM, Dyp), compute_dtype)],
        ),
        compiler_params=pltpu.CompilerParams(
            # Sy-tile axis must stay sequential ("arbitrary") for the xw scratch reuse;
            # the leading axes are safe to shard across TensorCores.
            dimension_semantics=("parallel", "parallel", "parallel", "arbitrary"),
            vmem_limit_bytes=vmem_limit,
        ),
        cost_estimate=cost,
    )(xp, wp, ytp)

    out = out[:, :, :Sx, :Sy]
    if n_out == 1:
        out = out[:, 0]  # torch .squeeze(1) only removes the axis when n_out == 1
    return out


if __name__ == "__main__":
    # Small deterministic example consistent with the module's forward:
    #   batch=2, seq=8, n_in=32, n_out=1, bias_x=bias_y=True, diagonal=False
    B, S, n_in, n_out = 2, 8, 32, 1
    D = n_in + 1

    key = jax.random.PRNGKey(0)
    kx, ky, kw = jax.random.split(key, 3)
    x = jax.random.normal(kx, (B, S, n_in), dtype=jnp.float32)
    y = jax.random.normal(ky, (B, S, n_in), dtype=jnp.float32)
    # Module's reset_parameters() zero-inits the weight (trivial output); use a
    # deterministic non-zero init of the same shape so the kernel is exercised.
    weight = 0.1 * jax.random.normal(kw, (n_out, D, D), dtype=jnp.float32)

    out = biaffine_forward(x, y, weight)
    out = jax.block_until_ready(out)

    # Pure-JAX f32 reference of the exact torch einsum semantics.
    xb = jnp.concatenate([x, jnp.ones_like(x[..., :1])], axis=-1)
    yb = jnp.concatenate([y, jnp.ones_like(y[..., :1])], axis=-1)
    ref = jnp.einsum('bxi,oij,byj->boxy', xb, weight, yb)[:, 0]

    assert out.shape == (B, S, S), out.shape
    # bf16 MXU operands / bf16 output with f32 accumulation -> relaxed tolerance.
    err = float(jnp.max(jnp.abs(out.astype(jnp.float32) - ref)))
    assert jnp.allclose(out.astype(jnp.float32), ref, atol=1e-1, rtol=1e-1), err
    print("KERNEL_OK")
</pallas_src>

<mosaic_0001>
module attributes {stable_mosaic.version = 11 : i64} {
  func.func @_biaffine_kernel(%arg0: i32, %arg1: i32, %arg2: i32, %arg3: i32, %arg4: memref<1x16x128xbf16, #tpu.memory_space<vmem>>, %arg5: memref<1x128x128xbf16, #tpu.memory_space<vmem>>, %arg6: memref<1x128x128xbf16, #tpu.memory_space<vmem>>, %arg7: memref<1x1x16x128xbf16, #tpu.memory_space<vmem>>, %arg8: memref<16x128xbf16, #tpu.memory_space<vmem>>) attributes {dimension_semantics = [#tpu.dimension_semantics<parallel>, #tpu.dimension_semantics<parallel>, #tpu.dimension_semantics<parallel>, #tpu.dimension_semantics<arbitrary>], iteration_bounds = array<i64: 2, 1, 1, 1>, scalar_prefetch = 0 : i64, scratch_operands = 1 : i64, tpu.core_type = #tpu.core_type<tc>, window_params = [{transform_indices = @transform_0, window_bounds = array<i64: 1, 16, 128>}, {transform_indices = @transform_1, window_bounds = array<i64: 1, 128, 128>}, {transform_indices = @transform_2, window_bounds = array<i64: 1, 128, 128>}, {transform_indices = @transform_3, window_bounds = array<i64: 1, 1, 16, 128>}]} {
    %c0_i32 = arith.constant 0 : i32
    %0 = arith.cmpi eq, %arg3, %c0_i32 : i32
    %1 = arith.extui %0 : i1 to i32
    %c0_i32_0 = arith.constant 0 : i32
    %2 = arith.cmpi ne, %1, %c0_i32_0 : i32
    scf.if %2 {
      %c0_9 = arith.constant 0 : index
      %c0_10 = arith.constant 0 : index
      %c0_11 = arith.constant 0 : index
      %11 = vector.load %arg4[%c0_9, %c0_10, %c0_11] : memref<1x16x128xbf16, #tpu.memory_space<vmem>>, vector<1x16x128xbf16>
      %12 = vector.shape_cast %11 : vector<1x16x128xbf16> to vector<16x128xbf16>
      %c0_12 = arith.constant 0 : index
      %c0_13 = arith.constant 0 : index
      %c0_14 = arith.constant 0 : index
      %13 = vector.load %arg5[%c0_12, %c0_13, %c0_14] : memref<1x128x128xbf16, #tpu.memory_space<vmem>>, vector<1x128x128xbf16>
      %14 = vector.shape_cast %13 : vector<1x128x128xbf16> to vector<128x128xbf16>
      %cst_15 = arith.constant dense<0.000000e+00> : vector<16x128xf32>
      %15 = tpu.matmul %12, %14, %cst_15 {dimension_numbers = #tpu.dot_dimension_numbers<[1], [0], [0], [1], [0, 0, 1, 1], [], []>} : vector<16x128xbf16>, vector<128x128xbf16>, vector<16x128xf32> -> vector<16x128xf32>
      %16 = arith.truncf %15 : vector<16x128xf32> to vector<16x128xbf16>
      %c0_16 = arith.constant 0 : index
      %c0_17 = arith.constant 0 : index
      %17 = vector.load %arg8[%c0_16, %c0_17] : memref<16x128xbf16, #tpu.memory_space<vmem>>, vector<16x128xbf16>
      tpu.vector_store %arg8[%c0_16, %c0_17], %16 {strides = array<i32>} : memref<16x128xbf16, #tpu.memory_space<vmem>>, vector<16x128xbf16>,
    } else {
    }
    %c0 = arith.constant 0 : index
    %c0_1 = arith.constant 0 : index
    %3 = vector.load %arg8[%c0, %c0_1] : memref<16x128xbf16, #tpu.memory_space<vmem>>, vector<16x128xbf16>
    %c0_2 = arith.constant 0 : index
    %c0_3 = arith.constant 0 : index
    %c0_4 = arith.constant 0 : index
    %4 = vector.load %arg6[%c0_2, %c0_3, %c0_4] : memref<1x128x128xbf16, #tpu.memory_space<vmem>>, vector<1x128x128xbf16>
    %5 = vector.shape_cast %4 : vector<1x128x128xbf16> to vector<128x128xbf16>
    %cst = arith.constant dense<0.000000e+00> : vector<16x128xf32>
    %6 = tpu.matmul %3, %5, %cst {dimension_numbers = #tpu.dot_dimension_numbers<[1], [0], [0], [1], [0, 0, 1, 1], [], []>} : vector<16x128xbf16>, vector<128x128xbf16>, vector<16x128xf32> -> vector<16x128xf32>
    %7 = arith.truncf %6 : vector<16x128xf32> to vector<16x128xbf16>
    %c0_5 = arith.constant 0 : index
    %c0_6 = arith.constant 0 : index
    %c0_7 = arith.constant 0 : index
    %c0_8 = arith.constant 0 : index
    %8 = vector.load %arg7[%c0_5, %c0_6, %c0_7, %c0_8] : memref<1x1x16x128xbf16, #tpu.memory_space<vmem>>, vector<1x1x16x128xbf16>
    %9 = vector.shape_cast %8 : vector<1x1x16x128xbf16> to vector<16x128xbf16>
    %10 = vector.shape_cast %7 : vector<16x128xbf16> to vector<1x1x16x128xbf16>
    tpu.vector_store %arg7[%c0_5, %c0_6, %c0_7, %c0_8], %10 {strides = array<i32>} : memref<1x1x16x128xbf16, #tpu.memory_space<vmem>>, vector<1x1x16x128xbf16>,
    return
  }
  func.func @transform_0(%arg0: i32, %arg1: i32, %arg2: i32, %arg3: i32) -> (i32, i32, i32) {
    %c0_i32 = arith.constant 0 : i32
    %c0_i32_0 = arith.constant 0 : i32
    return %arg0, %arg2, %c0_i32 : i32, i32, i32
  }
  func.func @transform_1(%arg0: i32, %arg1: i32, %arg2: i32, %arg3: i32) -> (i32, i32, i32) {
    %c0_i32 = arith.constant 0 : i32
    %c0_i32_0 = arith.constant 0 : i32
    %c0_i32_1 = arith.constant 0 : i32
    return %arg1, %c0_i32, %c0_i32_0 : i32, i32, i32
  }
  func.func @transform_2(%arg0: i32, %arg1: i32, %arg2: i32, %arg3: i32) -> (i32, i32, i32) {
    %c0_i32 = arith.constant 0 : i32
    %c0_i32_0 = arith.constant 0 : i32
    return %arg0, %c0_i32, %arg3 : i32, i32, i32
  }
  func.func @transform_3(%arg0: i32, %arg1: i32, %arg2: i32, %arg3: i32) -> (i32, i32, i32, i32) {
    %c0_i32 = arith.constant 0 : i32
    return %arg0, %arg1, %arg2, %arg3 : i32, i32, i32, i32
  }
}

</mosaic_0001>

<bundles_post_ra>
// kernel: tpu_custom_call.1
= control target key start
LH: loop header
LB: loop body
LE: loop exit
PB: predicated region body
PF: predicated region fallthrough
CT: control target
= control target key end

     0   :  { %8 = vsyncpa [#allocation4], 0  ;;  %s1386_s0 = inlined_call_operand.hbm [shape: bf16[2,16,128], index: 0, kind: input, shape index: {}]   ;;  %s1387_s1 = inlined_call_operand.hbm [shape: bf16[1,128,128], index: 1, kind: input, shape index: {}]   ;;  %s1388_s2 = inlined_call_operand.hbm [shape: bf16[2,128,128], index: 2, kind: input, shape index: {}]   ;;  %s1389_s3 = inlined_call_operand.hbm [shape: bf16[2,1,16,128], index: 3, kind: output, shape index: {}]  }
   0x1   :  { %10 = vsyncpa [#allocation4 + $0x1], 0 }
   0x2   :  { %11 = vsyncpa [#allocation7], 0 }
   0x3   :  { %12 = vsyncpa [#allocation5], 0 }
   0x4   :  { %14 = vsyncpa [#allocation5 + $0x1], 0  ;;  %s1094_s12 = smov 0   ;;  %s1096_s13 = smov 0  }
   0x5   :  { %s1098_s14 = smov 0   ;;  %s1100_s15 = smov 0  }
   0x6   :  { %s1102_s16 = smov 0   ;;  %s1104_s17 = smov 0  }
   0x7 LB: > { %s46_s18 = sadd.s32 1, %s1058_s16  ;;  %s55_s19 = sadd.s32 1, %s1050_s14  ;;  %s1062_s17 = sphi %s1104_s17, %s20_s17   ;;  %s1058_s16 = sphi %s1102_s16, %s1414_s16   ;;  %s1054_s15 = sphi %s1100_s15, %s1413_s15   ;;  %s1050_s14 = sphi %s1098_s14, %s1412_s14   ;;  %s1046_s13 = sphi %s1096_s13, %s1411_s13   ;;  %s1042_s12 = sphi %s1094_s12, %s1410_s12  }
   0x8   : > { %p48_p0 = scmp.ge.s32.totalorder %s46_s18, 2  ;;  %p62_p1 = scmp.ne.s32.totalorder %s1050_s14, %s1046_s13 }
   0x9   : > { %p63_p2 = scmp.eq.s32.totalorder %s1062_s17, 0  ;;  %p809_p6 = scmp.lt.s32.totalorder %s1062_s17, 2 }
   0xa   : > { %s1416_s18 = smov (%p48_p0, %s46_s18), 0  ;;  %s194_s22 = sand.u32 1, %s1062_s17  }
   0xb   : > { %p1134_p3 = por %p63_p2, %p62_p1  ;;  %s50_s21 = ssub.s32 %s1058_s16, %s1416_s18 }
   0xc   : > { %p53_p5 = scmp.eq.s32.totalorder %s50_s21, 0  ;;  %s196_s23 = sand.u32 1, %s1050_s14  }
   0xd   : > { %s680_s25 = sshll.u32 %s196_s23, 3  ;;  %s715_s26 = sshll.u32 %s1058_s16, 7 }
   0xe   : > { %s1145_s24 = scalar_select %p53_p5, %s1050_s14, %s55_s19  }
   0xf   : > { %s1151_s29 = scalar_lea.hbm %s1386_s0, %s715_s26  ;;  %s198_s30 = scalar_lea.vmem [#allocation3], %s680_s25 }
  0x10   : > { %s207_s4 = sshll.u32 %s198_s30, 4  ;;  %p1157_p7 = pnand %p809_p6, %p1134_p3  ;;  %s1153_s4 = int_to_ptr.vmem [resolvable:$true] %s207_s4 }
  0x11   : > { %s1161_s6 = sshll.u32 %s196_s23, 6  ;;  %s1163_s7 = scalar_lea.sflag [#allocation4], %s194_s22 }
  0x12   : > { %s884_s8 = scalar_lea.hbm %s1151_s29, 128  ;;  %p886_p9 = pneg %p1157_p7 }
  0x13   : > { %p885_p8 = scmp.ne.s32.totalorder %s1151_s29, %s884_s8  ;;  %s889_s11 = scalar_lea.hbm %s1386_s0, 256 }
  0x14   : > { %p890_p12 = scmp.lt.u32.totalorder %s1151_s29, %s1386_s0  ;;  %p891_p13 = scmp.lt.u32.totalorder %s889_s11, %s884_s8 }
  0x15   : > { %p887_p10 = pnand %p886_p9, %p885_p8  ;;  %p893_p2 = scmp.lt.u32.totalorder %s884_s8, %s1151_s29 }
  0x16   : > { %p892_p0 = por %p891_p13, %p890_p12 }
  0x17   : > { %p888_p11 = pneg %p887_p10 }
  0x18   : > { %p894_p3 = por %p893_p2, %p892_p0 }
  0x1a   : > { %p895_p5 = pnand %p894_p3, %p888_p11 }
  0x1c   : > { %898 = shalt.err (!%p895_p5)
}
  0x1d   : > { %s899_s21 = scalar_lea.vmem %s1153_s4, 128  ;;  %s1064_s22 = smov [#allocation3]  }
  0x1e   : > { %p900_p6 = scmp.ne.s32.totalorder %s1153_s4, %s899_s21  ;;  %s904_s23 = sshll.u32 %s1064_s22, 4  ;;  %s905_s23 = int_to_ptr.vmem [resolvable:$false] %s904_s23 }
  0x1f   : > { %s906_s25 = scalar_lea.vmem %s905_s23, 256  ;;  %p907_p4 = scmp.lt.s32.totalorder %s1153_s4, %s905_s23 }
  0x20   : > { %p902_p8 = pnand %p900_p6, %p886_p9  ;;  %p908_p12 = scmp.lt.s32.totalorder %s906_s25, %s899_s21 }
  0x22   : > { %p903_p10 = pneg %p902_p8  ;;  %p909_p13 = por %p908_p12, %p907_p4 }
  0x24   : > { %p910_p0 = pnand %p909_p13, %p903_p10 }
  0x26   : > { %913 = shalt.err (!%p910_p0)
}
  0x27   : > { %s1065_s26 = smov 64   ;;  %s1066_s27 = smov 4  }
  0x28   : > { %800 = dma.hbm_to_vmem [thread:$0]  (!%p1157_p7), %s1151_s29, 128, %s1153_s4, %s1163_s7, %s1065_s26, %s1065_s26, %s1066_s27  }
  0x29   : > { %s221_s28 = scalar_lea.vmem [#allocation8], %s1161_s6  ;;  %s1196_s8 = sadd.s32 4294967295, %s1062_s17  }
  0x2a   : > { %s229_s30 = sshll.u32 %s221_s28, 4  ;;  %s676_s9 = sadd.s32 4294967294, %s1062_s17   ;;  %s1236_s30 = int_to_ptr.vmem [resolvable:$true] %s229_s30 }
  0x2b   : > { %p68_p4 = scmp.ne.s32.totalorder %s1046_s13, %s1042_s12  ;;  %p1390_p11 = scmp.eq.s32.totalorder %s1196_s8, 0 }
  0x2c   : > { %p152_p2 = scmp.eq.s32.totalorder %s1196_s8, 1  ;;  %p158_p3 = scmp.eq.s32.totalorder %s676_s9, 1 }
  0x2d   : > { %p1205_p5 = por %p1390_p11, %p68_p4  ;;  %p677_p6 = scmp.ge.s32.totalorder %s1062_s17, 1 }
  0x2e   : > { %p1213_p8 = por %p152_p2, %p62_p1  ;;  %p1217_p10 = por %p158_p3, %p68_p4 }
  0x2f   : > { %s1396_s10 = scalar_select %p1205_p5, 1, 0 }
  0x30   : > { %s1397_s29 = scalar_select %p1213_p8, 1, 0 }
  0x31   : > { %s1398_s4 = scalar_select %p1217_p10, 1, 0 }
  0x32   : > { %p165_p12 = scmp.lt.s32.totalorder %s1062_s17, 3  ;;  %s716_s6 = sshll.u32 %s1058_s16, 10 }
  0x33   : > { %s1067_s19 = smov [#allocation6]   ;;  %s1232_s23 = scalar_lea.hbm %s1388_s2, %s716_s6 }
  0x34   : > { %p1223_p13 = pnand %p677_p6, %p165_p12  ;;  %s1227_s20 = sshll.u32 %s1067_s19, 4  ;;  %s181_s20 = int_to_ptr.vmem [resolvable:$true] %s1227_s20 }
  0x35   : > { %s914_s25 = scalar_lea.hbm %s1232_s23, 1024  ;;  %s919_s19 = scalar_lea.hbm %s1388_s2, 2048 }
  0x36   : > { %s1399_s11 = scalar_select %p1223_p13, 1, 0 }
  0x37   : > { %p915_p0 = scmp.ne.s32.totalorder %s1232_s23, %s914_s25  ;;  %p920_p3 = scmp.lt.u32.totalorder %s1232_s23, %s1388_s2 }
  0x38   : > { %p921_p6 = scmp.lt.u32.totalorder %s919_s19, %s914_s25  ;;  %p923_p11 = scmp.lt.u32.totalorder %s914_s25, %s1232_s23 }
  0x39   : > { %p917_p4 = pnand %p915_p0, %p886_p9 }
  0x3a   : > { %p922_p12 = por %p921_p6, %p920_p3 }
  0x3b   : > { %p918_p2 = pneg %p917_p4 }
  0x3c   : > { %p924_p1 = por %p923_p11, %p922_p12 }
  0x3e   : > { %p925_p10 = pnand %p924_p1, %p918_p2 }
  0x40   : > { %928 = shalt.err (!%p925_p10)
}
  0x41   : > { %s929_s22 = scalar_lea.vmem %s1236_s30, 1024  ;;  %s1068_s28 = smov [#allocation8]  }
  0x42   : > { %p930_p0 = scmp.ne.s32.totalorder %s1236_s30, %s929_s22  ;;  %s934_s9 = sshll.u32 %s1068_s28, 4  ;;  %s935_s9 = int_to_ptr.vmem [resolvable:$false] %s934_s9 }
  0x43   : > { %s936_s6 = scalar_lea.vmem %s935_s9, 2048  ;;  %p937_p5 = scmp.lt.s32.totalorder %s1236_s30, %s935_s9 }
  0x44   : > { %p932_p4 = pnand %p930_p0, %p886_p9  ;;  %p938_p3 = scmp.lt.s32.totalorder %s936_s6, %s929_s22 }
  0x46   : > { %p933_p8 = pneg %p932_p4  ;;  %p939_p6 = por %p938_p3, %p937_p5 }
  0x48   : > { %p940_p11 = pnand %p939_p6, %p933_p8 }
  0x4a   : > { %943 = shalt.err (!%p940_p11)
}
  0x4b   : > { %803 = dma.hbm_to_vmem [thread:$0]  (!%p1157_p7), %s1232_s23, 1024, %s1236_s30, %s1163_s7, %s1065_s26, %s1065_s26, %s1066_s27  }
  0x4c   : > { %p1400_p9 = scmp.eq.s32.totalorder %s1196_s8, 0  ;;  %p1401_p10 = pneg %p1223_p13 }
  0x4d   : > { %s944_s21 = scalar_lea.hbm %s1387_s1, 1024 }
  0x4e   : > { %p1271_p1 = pnand %p1401_p10, %p1400_p9  ;;  %p945_p5 = scmp.ne.s32.totalorder %s1387_s1, %s944_s21 }
  0x4f   : > { %p951_p12 = scmp.lt.u32.totalorder %s944_s21, %s1387_s1 }
  0x50   : > { %p946_p8 = pneg %p1271_p1 }
  0x52   : > { %p947_p7 = pnand %p946_p8, %p945_p5 }
  0x54   : > { %p948_p2 = pneg %p947_p7 }
  0x56   : > { %p953_p0 = pnand %p951_p12, %p948_p2 }
  0x58   : > { %956 = shalt.err (!%p953_p0)
}
  0x59   : > { %s957_s23 = scalar_lea.vmem %s181_s20, 1024  ;;  %p965_p11 = scmp.lt.s32.totalorder %s181_s20, %s181_s20 }
  0x5a   : > { %p958_p4 = scmp.ne.s32.totalorder %s181_s20, %s957_s23  ;;  %p966_p9 = scmp.lt.s32.totalorder %s957_s23, %s957_s23 }
  0x5c   : > { %p960_p3 = pnand %p958_p4, %p946_p8  ;;  %p967_p10 = por %p966_p9, %p965_p11 }
  0x5e   : > { %p961_p6 = pneg %p960_p3 }
  0x60   : > { %p968_p13 = pnand %p967_p10, %p961_p6 }
  0x62   : > { %971 = shalt.err (!%p968_p13)
}
  0x63   : > { %796 = dma.hbm_to_vmem [thread:$0]  (!%p1271_p1), %s1387_s1, 1024, %s181_s20, [#allocation7], %s1065_s26, %s1065_s26, %s1066_s27  }
  0x64   : > { %p1403_p5 = scmp.ne.s32.totalorder %s1399_s11, 0 }
  0x65   : > { %s243_s19 = sand.u32 (!%p1403_p5), 1, %s1196_s8   ;;  %s1298_s5 = sand.u32 (!%p1403_p5), 1, %s1046_s13  }
  0x66   : > { %241 = sbr.rel (%p1403_p5) target bundleno = 597 (0x255), region = 32  ;;  %s687_s21 = sshll.u32 (!%p1403_p5), %s1298_s5, 3 }
  0x67   : > { %s244_s25 = scalar_lea.sflag (!%p1403_p5), [#allocation4], %s243_s19  ;;  %s1303_s22 = scalar_lea.vmem (!%p1403_p5), [#allocation3], %s687_s21 }
  0x68   : > { %p1404_p13 = scmp.ne.s32.totalorder (!%p1403_p5), %s1396_s10, 0 }
  0x6d   : > { %1025 = dma.done.wait (%p1404_p13), %s244_s25, 128  }
  0x6e   : > { %1027 = vsyncadd (%p1404_p13), %s244_s25, 4294967168  ;;  %p1405_p1 = scmp.eq.s32.totalorder %s1196_s8, 0 }
  0x70   : > { %1029 = dma.done.wait (%p1405_p1), [#allocation7], 1024   ;;  %p1406_p8 = pmov %p1405_p1 }
  0x71   : > { %s689_s26 = sshll.u32 %s1298_s5, 6 }
  0x72   : > { %1031 = vsyncadd (%p1406_p8), [#allocation7], 4294966272  ;;  %s1314_s27 = scalar_lea.vmem [#allocation8], %s689_s26 }
  0x73   : > { %1033 = dma.done.wait (%p1404_p13), %s244_s25, 1024  }
  0x74   : > { %1035 = vsyncadd (%p1404_p13), %s244_s25, 4294966272  ;;  %v1069_v0 = vmov 0.0   ;;  %vm1070_vm0 = vmmov 0   ;;  %v867_v1 = vld [vmem:[#allocation6] sm:$0xff]   ;;  %v868_v2 = vld [vmem:[#allocation6 + $0x8] sm:$0xff]   ;;  %s287_s8 = scalar_lea.vmem [#allocation9], %s687_s21 }
  0x75   : > { %743 = vmatprep.subr.bf16.mxu0 %v1069_v0  ;;  %759 = vmatprep.mubr.msk.bf16.mxu0 %vm1070_vm0, %v1069_v0  ;;  %v869_v3 = vld [vmem:[#allocation6 + $0x10] sm:$0xff]   ;;  %v876_v4 = vld [vmem:[%s1314_s27] sm:$0xff]   ;;  %v870_v5 = vld [vmem:[#allocation6 + $0x18] sm:$0xff]   ;;  %s545_s10 = sshll.u32 %s287_s8, 4  ;;  %s719_s11 = sshll.u32 %s1054_s15, 7  ;;  %s1332_s10 = int_to_ptr.vmem [resolvable:$true] %s545_s10 }
  0x76   : > { %763 = vmatprep.subr.bf16.mxu1 %v1069_v0  ;;  %779 = vmatprep.mubr.msk.bf16.mxu1 %vm1070_vm0, %v1069_v0  ;;  %v877_v6 = vld [vmem:[%s1314_s27 + $0x8] sm:$0xff]   ;;  %v871_v7 = vld [vmem:[#allocation6 + $0x20] sm:$0xff]   ;;  %v878_v8 = vld [vmem:[%s1314_s27 + $0x10] sm:$0xff]   ;;  %s1337_s7 = scalar_lea.hbm %s1389_s3, %s719_s11  ;;  %s527_s30 = scalar_lea.sflag [#allocation5], %s1298_s5 }
  0x77   : > { %744 = vmatpush3.bf16.msra.mxu0 %v867_v1  ;;  %764 = vmatpush3.bf16.msra.mxu1 %v876_v4  ;;  %v872_v9 = vld [vmem:[#allocation6 + $0x28] sm:$0xff]   ;;  %v879_v10 = vld [vmem:[%s1314_s27 + $0x18] sm:$0xff]   ;;  %v873_v11 = vld [vmem:[#allocation6 + $0x30] sm:$0xff]   ;;  %s972_s23 = scalar_lea.vmem %s1332_s10, 128  ;;  %p1407_p2 = scmp.ne.s32.totalorder %s1397_s29, 0 }
  0x78   : > { %745 = vmatprep.subr.bf16.mxu0 %v1069_v0  ;;  %765 = vmatprep.subr.bf16.mxu1 %v1069_v0  ;;  %v880_v12 = vld [vmem:[%s1314_s27 + $0x20] sm:$0xff]   ;;  %v874_v13 = vld [vmem:[#allocation6 + $0x38] sm:$0xff]   ;;  %v881_v14 = vld [vmem:[%s1314_s27 + $0x28] sm:$0xff]   ;;  %p973_p7 = scmp.ne.s32.totalorder %s1332_s10, %s972_s23  ;;  %s1071_s15 = smov [#allocation9]  }
  0x79   : > { %v875_v15 = vld [vmem:[%s1303_s22] sm:$0xff]   ;;  %s976_s9 = sshll.u32 %s1071_s15, 4  ;;  %s977_s9 = int_to_ptr.vmem [resolvable:$false] %s976_s9 }
  0x7a   : > { %v882_v16 = vld [vmem:[%s1314_s27 + $0x30] sm:$0xff]   ;;  %v883_v17 = vld [vmem:[%s1314_s27 + $0x38] sm:$0xff]   ;;  %p974_p12 = pnand %p973_p7, %p1407_p2  ;;  %s978_s6 = scalar_lea.vmem %s977_s9, 256 }
  0x7b   : > { %746 = vmatpush3.bf16.msra.mxu0 %v868_v2  ;;  %766 = vmatpush3.bf16.msra.mxu1 %v877_v6  ;;  %p979_p4 = scmp.lt.s32.totalorder %s1332_s10, %s977_s9  ;;  %p980_p3 = scmp.lt.s32.totalorder %s978_s6, %s972_s23 }
  0x7c   : > { %747 = vmatprep.subr.bf16.mxu0 %v1069_v0  ;;  %767 = vmatprep.subr.bf16.mxu1 %v1069_v0  ;;  %p975_p0 = pneg %p974_p12 }
  0x7d   : > { %p981_p6 = por %p980_p3, %p979_p4 }
  0x7f   : > { %748 = vmatpush3.bf16.msra.mxu0 %v869_v3  ;;  %768 = vmatpush3.bf16.msra.mxu1 %v878_v8  ;;  %p982_p11 = pnand %p981_p6, %p975_p0 }
  0x80   : > { %749 = vmatprep.subr.bf16.mxu0 %v1069_v0  ;;  %769 = vmatprep.subr.bf16.mxu1 %v1069_v0 }
  0x83   : > { %750 = vmatpush3.bf16.msra.mxu0 %v870_v5  ;;  %770 = vmatpush3.bf16.msra.mxu1 %v879_v10 }
  0x84   : > { %751 = vmatprep.subr.bf16.mxu0 %v1069_v0  ;;  %771 = vmatprep.subr.bf16.mxu1 %v1069_v0 }
  0x87   : > { %752 = vmatpush3.bf16.msra.mxu0 %v871_v7  ;;  %772 = vmatpush3.bf16.msra.mxu1 %v880_v12 }
  0x88   : > { %753 = vmatprep.subr.bf16.mxu0 %v1069_v0  ;;  %773 = vmatprep.subr.bf16.mxu1 %v1069_v0 }
  0x8b   : > { %754 = vmatpush3.bf16.msra.mxu0 %v872_v9  ;;  %774 = vmatpush3.bf16.msra.mxu1 %v881_v14 }
  0x8c   : > { %755 = vmatprep.subr.bf16.mxu0 %v1069_v0  ;;  %775 = vmatprep.subr.bf16.mxu1 %v1069_v0 }
  0x8f   : > { %756 = vmatpush3.bf16.msra.mxu0 %v873_v11  ;;  %776 = vmatpush3.bf16.msra.mxu1 %v882_v16 }
  0x90   : > { %757 = vmatprep.subr.bf16.mxu0 %v1069_v0  ;;  %777 = vmatprep.subr.bf16.mxu1 %v1069_v0 }
  0x93   : > { %758 = vmatpush3.bf16.msra.mxu0 %v874_v13  ;;  %778 = vmatpush3.bf16.msra.mxu1 %v883_v17 }
  0x96   : > { %760 = vmatmul.mubr.bf16.vlgmr.msra.gmra.mrb[0].mxu0 %v875_v15 }
 0x169   : > { %v401_v18 = vpop.f32.mrb[0].mxu0 }
 0x16a   : > { %v761_v19 = vpop.f32.mrb[1].mxu0 }
 0x16b   : > { %v404_v20 = vpop.f32.mrb[2].mxu0 }
 0x16c   : > { %v408_v21 = vpack.c.bf16 %v404_v20, %v401_v18  ;;  %v762_v22 = vpop.f32.mrb[3].mxu0 }
 0x16e   : > { %780 = vmatmul.mubr.bf16.vlgmr.msra.gmra.mrb[0].mxu1 %v408_v21 }
 0x241   : > { %v509_v23 = vpop.f32.mrb[0].mxu1 }
 0x242   : > { %v781_v24 = vpop.f32.mrb[1].mxu1 }
 0x243   : > { %v512_v25 = vpop.f32.mrb[2].mxu1 }
 0x244   : > { %v723_v26 = vpack.c.bf16 %v512_v25, %v509_v23  ;;  %v782_v27 = vpop.f32.mrb[3].mxu1 }
 0x246   : > { %724 = vst [vmem:[%s287_s8] sm:$0xff] %v723_v26  }
 0x247   : > { %985 = shalt.err (!%p982_p11)
}
 0x248   : > { %s986_s19 = scalar_lea.hbm %s1337_s7, 128  ;;  %s990_s22 = scalar_lea.hbm %s1389_s3, 256 }
 0x249   : > { %p987_p9 = scmp.ne.s32.totalorder %s1337_s7, %s986_s19  ;;  %p991_p13 = scmp.lt.u32.totalorder %s1337_s7, %s1389_s3 }
 0x24a   : > { %p992_p1 = scmp.lt.u32.totalorder %s990_s22, %s986_s19  ;;  %p994_p7 = scmp.lt.u32.totalorder %s986_s19, %s1337_s7 }
 0x24b   : > { %p988_p10 = pnand %p987_p9, %p1407_p2 }
 0x24c   : > { %p993_p8 = por %p992_p1, %p991_p13 }
 0x24d   : > { %p989_p5 = pneg %p988_p10 }
 0x24e   : > { %p995_p12 = por %p994_p7, %p993_p8 }
 0x250   : > { %p996_p0 = pnand %p995_p12, %p989_p5 }
 0x252   : > { %999 = shalt.err (!%p996_p0)
}
 0x253   : > { %s1072_s8 = smov 64   ;;  %s1073_s11 = smov 4  }
 0x254   : > { %791 = dma.vmem_to_hbm [thread:$0]  (%p1407_p2), %s1332_s10, 128, %s1337_s7, %s527_s30, %s1072_s8, %s1072_s8, %s1073_s11  }
 0x255 PF: > { %s560_s20 = sand.u32 1, %s1042_s12   ;;  %p1408_p4 = scmp.ne.s32.totalorder %s1398_s4, 0 }
 0x256   : > { %p1409_p3 = scmp.ge.s32.totalorder %s1062_s17, 2  ;;  %s561_s28 = scalar_lea.sflag [#allocation5], %s560_s20 }
 0x258   : > { %p805_p6 = pnand %p1409_p3, %p1408_p4 }
 0x25a   : > { %1037 = dma.done.wait (!%p805_p6), %s561_s28, 128  }
 0x25b   : > { %1039 = vsyncadd (!%p805_p6), %s561_s28, 4294967168  ;;  %s20_s17 = sadd.s32 1, %s1062_s17   ;;  %s1410_s12 = smov %s1046_s13 }
 0x25c   : > { %p17_p11 = scmp.ge.s32.totalorder %s20_s17, 4   ;;  %s1411_s13 = smov %s1050_s14 }
 0x25d   : > { %s1412_s14 = smov %s1145_s24  ;;  %s1413_s15 = smov %s1058_s16 }
 0x25e   : > { %s1414_s16 = smov %s1416_s18  ;;  %19 = sbr.rel (!%p17_p11) target bundleno = 7 (0x7), region = 97 }
 0x265   :  { %566 = vsyncpa [#allocation4], 1 }
 0x266   :  { %568 = vsyncpa [#allocation4 + $0x1], 1 }
 0x267   :  { %569 = vsyncpa [#allocation7], 1 }
 0x268   :  { %570 = vsyncpa [#allocation5], 1 }
 0x269   :  { %572 = vsyncpa [#allocation5 + $0x1], 1 }

</bundles_post_ra>
